<compile_context>
chip_gen: v6e
topology: v6e:2x2x1
jax: 0.10.0
libtpu: 0.0.40
codegen_flags: <defaults>
</compile_context>

<pallas_src>
import jax
import jax.numpy as jnp
from jax.experimental import pallas as pl
from jax.experimental.pallas import tpu as pltpu

VMEM = pltpu.MemorySpace.VMEM


def _vmem_specs(n):
    return [pl.BlockSpec(memory_space=VMEM) for _ in range(n)]


# ----------------------------------------------------------------------------
# Fused forward kernel
# ----------------------------------------------------------------------------
def _b3c_fused_kernel(feat_ref, adj_ref, s_ref,
                      ew1_ref, eb1_ref, ew2_ref, eb2_ref,
                      clu_ref, c2_ref,
                      dw1_ref, db1_ref, dw2_ref, db2_ref,
                      emb_ref, recon_ref, xbar_ref, q_ref, top1_ref, top2_ref):
    f32 = jnp.float32

    # ---- encoder: Linear -> ReLU -> Linear (fz stays on-chip) ---------------
    h = jnp.dot(feat_ref[...], ew1_ref[...], preferred_element_type=f32)
    h = jnp.maximum(h + eb1_ref[...], 0.0)
    fz = jnp.dot(h, ew2_ref[...], preferred_element_type=f32) + eb2_ref[...]

    # ---- graph propagation: 0.5*(A@fz) + 0.5*(S@fz) == (0.5*(A+S)) @ fz -----
    mix = 0.5 * (adj_ref[...] + s_ref[...])
    emb = jnp.dot(mix, fz, preferred_element_type=f32)
    emb_ref[...] = emb.astype(emb_ref.dtype)

    # ---- cluster soft assignment (Student-t, alpha=1 => power term is 1) ----
    c = clu_ref[...]                                                  # [K, H1]
    zc = jax.lax.dot_general(emb, c, (((1,), (1,)), ((), ())),
                             preferred_element_type=f32)              # [N, K]
    z2 = jnp.sum(emb * emb, axis=1, keepdims=True)                    # [N, 1]
    dist = z2 - 2.0 * zc + c2_ref[...]                                # [N, K]
    dist = jnp.maximum(dist, 0.0)     # guard fp round-off (true dist >= 0)

    q = pl.reciprocal(1.0 + dist, approx=True)
    q = q * pl.reciprocal(jnp.sum(q, axis=1, keepdims=True), approx=True)
    q_ref[...] = q.astype(q_ref.dtype)

    # ---- in-kernel top-2 smallest-distance cluster indices ------------------
    n_rows, k = dist.shape
    k_idx = jax.lax.broadcasted_iota(jnp.int32, (n_rows, k), 1)
    big = jnp.int32(k)

    min1 = jnp.min(dist, axis=1, keepdims=True)
    idx1 = jnp.min(jnp.where(dist == min1, k_idx, big), axis=1, keepdims=True)

    dist2 = jnp.where(k_idx == idx1, jnp.inf, dist)
    min2 = jnp.min(dist2, axis=1, keepdims=True)
    idx2 = jnp.min(jnp.where(dist2 == min2, k_idx, big), axis=1, keepdims=True)

    top1_ref[...] = idx1
    top2_ref[...] = idx2

    # ---- inner-product decoder z @ z.T (identity act, dropout=0) ------------
    # Computed once; the caller reuses it for every view.
    recon = jax.lax.dot_general(emb, emb, (((1,), (1,)), ((), ())),
                                preferred_element_type=f32)
    recon_ref[...] = recon.astype(recon_ref.dtype)

    # ---- feature decoder: Linear -> ReLU -> Linear ---------------------------
    hd = jnp.dot(emb, dw1_ref[...], preferred_element_type=f32)
    hd = jnp.maximum(hd + db1_ref[...], 0.0)
    xbar = jnp.dot(hd, dw2_ref[...], preferred_element_type=f32) + db2_ref[...]
    xbar_ref[...] = xbar.astype(xbar_ref.dtype)


# ----------------------------------------------------------------------------
# B3C forward (mirrors the PyTorch module, one pallas_call)
# ----------------------------------------------------------------------------
def b3c_forward(params, features, adjs, input_view, s_mat, n_views):
    n, in_features = features.shape
    h1 = params["enc_w2"].shape[1]
    n_cluster = params["cluster_layer"].shape[0]

    # per-cluster squared norms, precomputed once (K scalars)
    c2 = jnp.sum(params["cluster_layer"] * params["cluster_layer"],
                 axis=1, keepdims=True).T                              # [1, K]

    out_shapes = (
        jax.ShapeDtypeStruct((n, h1), jnp.float32),          # embeddings
        jax.ShapeDtypeStruct((n, n), jnp.float32),           # recon (shared)
        jax.ShapeDtypeStruct((n, in_features), jnp.float32), # x_bar
        jax.ShapeDtypeStruct((n, n_cluster), jnp.float32),   # q
        jax.ShapeDtypeStruct((n, 1), jnp.int32),             # top1
        jax.ShapeDtypeStruct((n, 1), jnp.int32),             # top2
    )

    emb, recon, x_bar, q, top1, top2 = pl.pallas_call(
        _b3c_fused_kernel,
        out_shape=out_shapes,
        in_specs=_vmem_specs(13),
        out_specs=tuple(pl.BlockSpec(memory_space=VMEM) for _ in range(6)),
    )(features, adjs[input_view], s_mat,
      params["enc_w1"], params["enc_b1"], params["enc_w2"], params["enc_b2"],
      params["cluster_layer"], c2,
      params["dec_w1"], params["dec_b1"], params["dec_w2"], params["dec_b2"])

    # identity activation + dropout=0 => every view's reconstruction is the
    # same z @ z.T; reuse the single kernel output n_views times.
    reconstructed_views = [recon for _ in range(n_views)]

    return (emb, reconstructed_views, x_bar, q, top1[:, 0], top2[:, 0],
            params["cluster_layer"])


# ----------------------------------------------------------------------------
# Deterministic parameter initialization (shapes match the PyTorch __init__)
# ----------------------------------------------------------------------------
def init_params(key, in_features, hidden, n_cluster):
    h0, h1 = hidden[0], hidden[1]
    keys = jax.random.split(key, 9)

    def linear(kw, kb, fan_in, fan_out):
        bound = 1.0 / jnp.sqrt(jnp.float32(fan_in))
        w = jax.random.uniform(kw, (fan_in, fan_out), jnp.float32, -bound, bound)
        b = jax.random.uniform(kb, (1, fan_out), jnp.float32, -bound, bound)
        return w, b

    enc_w1, enc_b1 = linear(keys[0], keys[1], in_features, h0)
    enc_w2, enc_b2 = linear(keys[2], keys[3], h0, h1)
    dec_w1, dec_b1 = linear(keys[4], keys[5], h1, h0)
    dec_w2, dec_b2 = linear(keys[6], keys[7], h0, in_features)

    # xavier_normal_ for cluster_layer [n_cluster, h1]
    std = jnp.sqrt(2.0 / jnp.float32(n_cluster + h1))
    cluster_layer = std * jax.random.normal(keys[8], (n_cluster, h1), jnp.float32)

    return dict(enc_w1=enc_w1, enc_b1=enc_b1, enc_w2=enc_w2, enc_b2=enc_b2,
                dec_w1=dec_w1, dec_b1=dec_b1, dec_w2=dec_w2, dec_b2=dec_b2,
                cluster_layer=cluster_layer)


if __name__ == "__main__":
    N = 16            # number of graph nodes
    in_features = 32
    hidden = [32, 16]
    n_views = 2
    n_cluster = 4
    input_view = 0

    key = jax.random.PRNGKey(0)
    k_par, k_feat, k_adj, k_s = jax.random.split(key, 4)

    params = init_params(k_par, in_features, hidden, n_cluster)

    features = jax.random.normal(k_feat, (N, in_features), jnp.float32)

    # symmetric row-stochastic-ish adjacency / similarity matrices
    adj_keys = jax.random.split(k_adj, n_views)
    adjs = []
    for v in range(n_views):
        a = jax.random.uniform(adj_keys[v], (N, N), jnp.float32)
        a = 0.5 * (a + a.T)
        a = a / jnp.sum(a, axis=1, keepdims=True)
        adjs.append(a)
    s_mat = jax.random.uniform(k_s, (N, N), jnp.float32)
    s_mat = s_mat / jnp.sum(s_mat, axis=1, keepdims=True)

    out = b3c_forward(params, features, adjs, input_view, s_mat, n_views)
    out = jax.block_until_ready(out)

    embeddings, recon_views, x_bar, q, top1, top2, cluster_layer = out
    assert embeddings.shape == (N, hidden[1])
    assert len(recon_views) == n_views and recon_views[0].shape == (N, N)
    assert x_bar.shape == (N, in_features)
    assert q.shape == (N, n_cluster)
    assert top1.shape == (N,) and top2.shape == (N,)
    assert top1.dtype == jnp.int32 and top2.dtype == jnp.int32
    assert cluster_layer.shape == (n_cluster, hidden[1])
    # q rows should (approximately) sum to 1
    assert jnp.all(jnp.abs(jnp.sum(q, axis=1) - 1.0) < 1e-2)

    print("KERNEL_OK")
</pallas_src>

<mosaic_0001>
module attributes {stable_mosaic.version = 11 : i64} {
  func.func @_b3c_fused_kernel(%arg0: memref<16x32xf32, #tpu.memory_space<vmem>>, %arg1: memref<16x16xf32, #tpu.memory_space<vmem>>, %arg2: memref<16x16xf32, #tpu.memory_space<vmem>>, %arg3: memref<32x32xf32, #tpu.memory_space<vmem>>, %arg4: memref<1x32xf32, #tpu.memory_space<vmem>>, %arg5: memref<32x16xf32, #tpu.memory_space<vmem>>, %arg6: memref<1x16xf32, #tpu.memory_space<vmem>>, %arg7: memref<4x16xf32, #tpu.memory_space<vmem>>, %arg8: memref<1x4xf32, #tpu.memory_space<vmem>>, %arg9: memref<16x32xf32, #tpu.memory_space<vmem>>, %arg10: memref<1x32xf32, #tpu.memory_space<vmem>>, %arg11: memref<32x32xf32, #tpu.memory_space<vmem>>, %arg12: memref<1x32xf32, #tpu.memory_space<vmem>>, %arg13: memref<16x16xf32, #tpu.memory_space<vmem>>, %arg14: memref<16x16xf32, #tpu.memory_space<vmem>>, %arg15: memref<16x32xf32, #tpu.memory_space<vmem>>, %arg16: memref<16x4xf32, #tpu.memory_space<vmem>>, %arg17: memref<16x1xi32, #tpu.memory_space<vmem>>, %arg18: memref<16x1xi32, #tpu.memory_space<vmem>>) attributes {dimension_semantics = [], scalar_prefetch = 0 : i64, scratch_operands = 0 : i64, tpu.core_type = #tpu.core_type<tc>} {
    %c0 = arith.constant 0 : index
    %c0_0 = arith.constant 0 : index
    %0 = vector.load %arg0[%c0, %c0_0] : memref<16x32xf32, #tpu.memory_space<vmem>>, vector<16x32xf32>
    %c0_1 = arith.constant 0 : index
    %c0_2 = arith.constant 0 : index
    %1 = vector.load %arg3[%c0_1, %c0_2] : memref<32x32xf32, #tpu.memory_space<vmem>>, vector<32x32xf32>
    %cst = arith.constant dense<0.000000e+00> : vector<16x32xf32>
    %2 = tpu.matmul %0, %1, %cst {dimension_numbers = #tpu.dot_dimension_numbers<[1], [0], [0], [1], [0, 0, 1, 1], [], []>} : vector<16x32xf32>, vector<32x32xf32>, vector<16x32xf32> -> vector<16x32xf32>
    %c0_3 = arith.constant 0 : index
    %c0_4 = arith.constant 0 : index
    %3 = vector.load %arg4[%c0_3, %c0_4] : memref<1x32xf32, #tpu.memory_space<vmem>>, vector<1x32xf32>
    %4 = vector.broadcast %3 : vector<1x32xf32> to vector<16x32xf32>
    %5 = arith.addf %2, %4 : vector<16x32xf32>
    %cst_5 = arith.constant 0.000000e+00 : f32
    %6 = vector.broadcast %cst_5 : f32 to vector<16x32xf32>
    %7 = arith.maximumf %5, %6 : vector<16x32xf32>
    %c0_6 = arith.constant 0 : index
    %c0_7 = arith.constant 0 : index
    %8 = vector.load %arg5[%c0_6, %c0_7] : memref<32x16xf32, #tpu.memory_space<vmem>>, vector<32x16xf32>
    %cst_8 = arith.constant dense<0.000000e+00> : vector<16x16xf32>
    %9 = tpu.matmul %7, %8, %cst_8 {dimension_numbers = #tpu.dot_dimension_numbers<[1], [0], [0], [1], [0, 0, 1, 1], [], []>} : vector<16x32xf32>, vector<32x16xf32>, vector<16x16xf32> -> vector<16x16xf32>
    %c0_9 = arith.constant 0 : index
    %c0_10 = arith.constant 0 : index
    %10 = vector.load %arg6[%c0_9, %c0_10] : memref<1x16xf32, #tpu.memory_space<vmem>>, vector<1x16xf32>
    %11 = vector.broadcast %10 : vector<1x16xf32> to vector<16x16xf32>
    %12 = arith.addf %9, %11 : vector<16x16xf32>
    %c0_11 = arith.constant 0 : index
    %c0_12 = arith.constant 0 : index
    %13 = vector.load %arg1[%c0_11, %c0_12] : memref<16x16xf32, #tpu.memory_space<vmem>>, vector<16x16xf32>
    %c0_13 = arith.constant 0 : index
    %c0_14 = arith.constant 0 : index
    %14 = vector.load %arg2[%c0_13, %c0_14] : memref<16x16xf32, #tpu.memory_space<vmem>>, vector<16x16xf32>
    %15 = arith.addf %13, %14 : vector<16x16xf32>
    %cst_15 = arith.constant 5.000000e-01 : f32
    %16 = vector.broadcast %cst_15 : f32 to vector<16x16xf32>
    %17 = arith.mulf %16, %15 : vector<16x16xf32>
    %cst_16 = arith.constant dense<0.000000e+00> : vector<16x16xf32>
    %18 = tpu.matmul %17, %12, %cst_16 {dimension_numbers = #tpu.dot_dimension_numbers<[1], [0], [0], [1], [0, 0, 1, 1], [], []>} : vector<16x16xf32>, vector<16x16xf32>, vector<16x16xf32> -> vector<16x16xf32>
    %c0_17 = arith.constant 0 : index
    %c0_18 = arith.constant 0 : index
    %19 = vector.load %arg13[%c0_17, %c0_18] : memref<16x16xf32, #tpu.memory_space<vmem>>, vector<16x16xf32>
    tpu.vector_store %arg13[%c0_17, %c0_18], %18 {strides = array<i32>} : memref<16x16xf32, #tpu.memory_space<vmem>>, vector<16x16xf32>,
    %c0_19 = arith.constant 0 : index
    %c0_20 = arith.constant 0 : index
    %20 = vector.load %arg7[%c0_19, %c0_20] : memref<4x16xf32, #tpu.memory_space<vmem>>, vector<4x16xf32>
    %cst_21 = arith.constant dense<0.000000e+00> : vector<16x4xf32>
    %21 = tpu.matmul %18, %20, %cst_21 {dimension_numbers = #tpu.dot_dimension_numbers<[1], [1], [0], [0], [0, 0, 1, 0], [], []>} : vector<16x16xf32>, vector<4x16xf32>, vector<16x4xf32> -> vector<16x4xf32>
    %22 = arith.mulf %18, %18 : vector<16x16xf32>
    %cst_22 = arith.constant dense<0.000000e+00> : vector<16xf32>
    %23 = vector.multi_reduction <add>, %22, %cst_22 [1] : vector<16x16xf32> to vector<16xf32>
    %24 = vector.shape_cast %23 : vector<16xf32> to vector<16x1xf32>
    %cst_23 = arith.constant 2.000000e+00 : f32
    %25 = vector.broadcast %cst_23 : f32 to vector<16x4xf32>
    %26 = arith.mulf %25, %21 : vector<16x4xf32>
    %27 = vector.broadcast %24 : vector<16x1xf32> to vector<16x4xf32>
    %28 = arith.subf %27, %26 : vector<16x4xf32>
    %c0_24 = arith.constant 0 : index
    %c0_25 = arith.constant 0 : index
    %29 = vector.load %arg8[%c0_24, %c0_25] : memref<1x4xf32, #tpu.memory_space<vmem>>, vector<1x4xf32>
    %30 = vector.broadcast %29 : vector<1x4xf32> to vector<16x4xf32>
    %31 = arith.addf %28, %30 : vector<16x4xf32>
    %cst_26 = arith.constant 0.000000e+00 : f32
    %32 = vector.broadcast %cst_26 : f32 to vector<16x4xf32>
    %33 = arith.maximumf %31, %32 : vector<16x4xf32>
    %cst_27 = arith.constant 1.000000e+00 : f32
    %34 = vector.broadcast %cst_27 : f32 to vector<16x4xf32>
    %35 = arith.addf %34, %33 : vector<16x4xf32>
    %36 = tpu.reciprocal %35 {approx = true} : vector<16x4xf32> -> vector<16x4xf32>
    %cst_28 = arith.constant dense<0.000000e+00> : vector<16xf32>
    %37 = vector.multi_reduction <add>, %36, %cst_28 [1] : vector<16x4xf32> to vector<16xf32>
    %38 = vector.shape_cast %37 : vector<16xf32> to vector<16x1xf32>
    %39 = tpu.reciprocal %38 {approx = true} : vector<16x1xf32> -> vector<16x1xf32>
    %40 = vector.broadcast %39 : vector<16x1xf32> to vector<16x4xf32>
    %41 = arith.mulf %36, %40 : vector<16x4xf32>
    %c0_29 = arith.constant 0 : index
    %c0_30 = arith.constant 0 : index
    %42 = vector.load %arg16[%c0_29, %c0_30] : memref<16x4xf32, #tpu.memory_space<vmem>>, vector<16x4xf32>
    tpu.vector_store %arg16[%c0_29, %c0_30], %41 {strides = array<i32>} : memref<16x4xf32, #tpu.memory_space<vmem>>, vector<16x4xf32>,
    %43 = tpu.iota {dimensions = array<i32: 1>} : vector<16x4xi32>
    %cst_31 = arith.constant dense<0x7F800000> : vector<16xf32>
    %44 = vector.multi_reduction <minimumf>, %33, %cst_31 [1] : vector<16x4xf32> to vector<16xf32>
    %45 = vector.shape_cast %44 : vector<16xf32> to vector<16x1xf32>
    %46 = vector.broadcast %45 : vector<16x1xf32> to vector<16x4xf32>
    %47 = arith.cmpf oeq, %33, %46 : vector<16x4xf32>
    %c4_i32 = arith.constant 4 : i32
    %48 = vector.broadcast %c4_i32 : i32 to vector<16x4xi32>
    %49 = arith.select %47, %43, %48 : vector<16x4xi1>, vector<16x4xi32>
    %cst_32 = arith.constant dense<2147483647> : vector<16xi32>
    %50 = vector.multi_reduction <minsi>, %49, %cst_32 [1] : vector<16x4xi32> to vector<16xi32>
    %51 = vector.shape_cast %50 : vector<16xi32> to vector<16x1xi32>
    %52 = vector.broadcast %51 : vector<16x1xi32> to vector<16x4xi32>
    %53 = arith.cmpi eq, %43, %52 : vector<16x4xi32>
    %cst_33 = arith.constant 0x7F800000 : f32
    %54 = vector.broadcast %cst_33 : f32 to vector<16x4xf32>
    %55 = arith.select %53, %54, %33 : vector<16x4xi1>, vector<16x4xf32>
    %cst_34 = arith.constant dense<0x7F800000> : vector<16xf32>
    %56 = vector.multi_reduction <minimumf>, %55, %cst_34 [1] : vector<16x4xf32> to vector<16xf32>
    %57 = vector.shape_cast %56 : vector<16xf32> to vector<16x1xf32>
    %58 = vector.broadcast %57 : vector<16x1xf32> to vector<16x4xf32>
    %59 = arith.cmpf oeq, %55, %58 : vector<16x4xf32>
    %c4_i32_35 = arith.constant 4 : i32
    %60 = vector.broadcast %c4_i32_35 : i32 to vector<16x4xi32>
    %61 = arith.select %59, %43, %60 : vector<16x4xi1>, vector<16x4xi32>
    %cst_36 = arith.constant dense<2147483647> : vector<16xi32>
    %62 = vector.multi_reduction <minsi>, %61, %cst_36 [1] : vector<16x4xi32> to vector<16xi32>
    %63 = vector.shape_cast %62 : vector<16xi32> to vector<16x1xi32>
    %c0_37 = arith.constant 0 : index
    %c0_38 = arith.constant 0 : index
    %64 = vector.load %arg17[%c0_37, %c0_38] : memref<16x1xi32, #tpu.memory_space<vmem>>, vector<16x1xi32>
    tpu.vector_store %arg17[%c0_37, %c0_38], %51 {strides = array<i32>} : memref<16x1xi32, #tpu.memory_space<vmem>>, vector<16x1xi32>,
    %c0_39 = arith.constant 0 : index
    %c0_40 = arith.constant 0 : index
    %65 = vector.load %arg18[%c0_39, %c0_40] : memref<16x1xi32, #tpu.memory_space<vmem>>, vector<16x1xi32>
    tpu.vector_store %arg18[%c0_39, %c0_40], %63 {strides = array<i32>} : memref<16x1xi32, #tpu.memory_space<vmem>>, vector<16x1xi32>,
    %cst_41 = arith.constant dense<0.000000e+00> : vector<16x16xf32>
    %66 = tpu.matmul %18, %18, %cst_41 {dimension_numbers = #tpu.dot_dimension_numbers<[1], [1], [0], [0], [0, 0, 1, 0], [], []>} : vector<16x16xf32>, vector<16x16xf32>, vector<16x16xf32> -> vector<16x16xf32>
    %c0_42 = arith.constant 0 : index
    %c0_43 = arith.constant 0 : index
    %67 = vector.load %arg14[%c0_42, %c0_43] : memref<16x16xf32, #tpu.memory_space<vmem>>, vector<16x16xf32>
    tpu.vector_store %arg14[%c0_42, %c0_43], %66 {strides = array<i32>} : memref<16x16xf32, #tpu.memory_space<vmem>>, vector<16x16xf32>,
    %c0_44 = arith.constant 0 : index
    %c0_45 = arith.constant 0 : index
    %68 = vector.load %arg9[%c0_44, %c0_45] : memref<16x32xf32, #tpu.memory_space<vmem>>, vector<16x32xf32>
    %cst_46 = arith.constant dense<0.000000e+00> : vector<16x32xf32>
    %69 = tpu.matmul %18, %68, %cst_46 {dimension_numbers = #tpu.dot_dimension_numbers<[1], [0], [0], [1], [0, 0, 1, 1], [], []>} : vector<16x16xf32>, vector<16x32xf32>, vector<16x32xf32> -> vector<16x32xf32>
    %c0_47 = arith.constant 0 : index
    %c0_48 = arith.constant 0 : index
    %70 = vector.load %arg10[%c0_47, %c0_48] : memref<1x32xf32, #tpu.memory_space<vmem>>, vector<1x32xf32>
    %71 = vector.broadcast %70 : vector<1x32xf32> to vector<16x32xf32>
    %72 = arith.addf %69, %71 : vector<16x32xf32>
    %cst_49 = arith.constant 0.000000e+00 : f32
    %73 = vector.broadcast %cst_49 : f32 to vector<16x32xf32>
    %74 = arith.maximumf %72, %73 : vector<16x32xf32>
    %c0_50 = arith.constant 0 : index
    %c0_51 = arith.constant 0 : index
    %75 = vector.load %arg11[%c0_50, %c0_51] : memref<32x32xf32, #tpu.memory_space<vmem>>, vector<32x32xf32>
    %cst_52 = arith.constant dense<0.000000e+00> : vector<16x32xf32>
    %76 = tpu.matmul %74, %75, %cst_52 {dimension_numbers = #tpu.dot_dimension_numbers<[1], [0], [0], [1], [0, 0, 1, 1], [], []>} : vector<16x32xf32>, vector<32x32xf32>, vector<16x32xf32> -> vector<16x32xf32>
    %c0_53 = arith.constant 0 : index
    %c0_54 = arith.constant 0 : index
    %77 = vector.load %arg12[%c0_53, %c0_54] : memref<1x32xf32, #tpu.memory_space<vmem>>, vector<1x32xf32>
    %78 = vector.broadcast %77 : vector<1x32xf32> to vector<16x32xf32>
    %79 = arith.addf %76, %78 : vector<16x32xf32>
    %c0_55 = arith.constant 0 : index
    %c0_56 = arith.constant 0 : index
    %80 = vector.load %arg15[%c0_55, %c0_56] : memref<16x32xf32, #tpu.memory_space<vmem>>, vector<16x32xf32>
    tpu.vector_store %arg15[%c0_55, %c0_56], %79 {strides = array<i32>} : memref<16x32xf32, #tpu.memory_space<vmem>>, vector<16x32xf32>,
    return
  }
}

</mosaic_0001>

<bundles_post_ra>
// kernel: tpu_custom_call.1
= control target key start
LH: loop header
LB: loop body
LE: loop exit
PB: predicated region body
PF: predicated region fallthrough
CT: control target
= control target key end

     0   :  { %s1626_s0 = inlined_call_operand.hbm [shape: f32[16,32], index: 0, kind: input, shape index: {}]   ;;  %s1627_s1 = inlined_call_operand.hbm [shape: f32[16,16], index: 1, kind: input, shape index: {}]   ;;  %s1628_s2 = inlined_call_operand.hbm [shape: f32[16,16], index: 2, kind: input, shape index: {}]   ;;  %s1629_s3 = inlined_call_operand.vmem [shape: f32[32,32], index: 3, kind: input, shape index: {}]   ;;  %s1630_s4 = inlined_call_operand.hbm [shape: f32[1,32], index: 4, kind: input, shape index: {}]   ;;  %s1631_s5 = inlined_call_operand.vmem [shape: f32[32,16], index: 5, kind: input, shape index: {}]   ;;  %s1632_s6 = inlined_call_operand.hbm [shape: f32[1,16], index: 6, kind: input, shape index: {}]   ;;  %s1633_s7 = inlined_call_operand.hbm [shape: f32[4,16], index: 7, kind: input, shape index: {}]   ;;  %s1634_s8 = inlined_call_operand.hbm [shape: f32[1,4], index: 8, kind: input, shape index: {}]   ;;  %s1635_s9 = inlined_call_operand.hbm [shape: f32[16,32], index: 9, kind: input, shape index: {}]   ;;  %s1636_s10 = inlined_call_operand.vmem [shape: f32[1,32], index: 10, kind: input, shape index: {}]   ;;  %s1637_s11 = inlined_call_operand.vmem [shape: f32[32,32], index: 11, kind: input, shape index: {}]   ;;  %s1638_s12 = inlined_call_operand.vmem [shape: f32[1,32], index: 12, kind: input, shape index: {}]   ;;  %s1639_s13 = inlined_call_operand.hbm [shape: f32[16,16], index: 13, kind: output, shape index: {0}]   ;;  %s1640_s14 = inlined_call_operand.hbm [shape: f32[16,16], index: 14, kind: output, shape index: {1}]   ;;  %s1641_s15 = inlined_call_operand.hbm [shape: f32[16,32], index: 15, kind: output, shape index: {2}]   ;;  %s1642_s16 = inlined_call_operand.vmem [shape: f32[16,4], index: 16, kind: output, shape index: {3}]   ;;  %s1643_s17 = inlined_call_operand.vmem [shape: s32[16,1], index: 17, kind: output, shape index: {4}]   ;;  %s1644_s18 = inlined_call_operand.vmem [shape: s32[16,1], index: 18, kind: output, shape index: {5}]  }
   0x1   :  { %1645 = sst [smem:[#allocation27_spill]] %s1626_s0 }
   0x2   :  { %1646 = sst [smem:[#allocation28_spill]] %s1627_s1 }
   0x3   :  { %1647 = sst [smem:[#allocation29_spill]] %s1628_s2 }
   0x4   :  { %24 = vsyncpa [#allocation3], 0 }
   0x5   :  { %25 = vsyncpa [#allocation6], 0 }
   0x6   :  { %26 = vsyncpa [#allocation9], 0 }
   0x7   :  { %27 = vsyncpa [#allocation12], 0 }
   0x8   :  { %28 = vsyncpa [#allocation15], 0 }
   0x9   :  { %29 = vsyncpa [#allocation4], 0 }
   0xa   :  { %30 = vsyncpa [#allocation18], 0  ;;  %s1340_s27 = smov [#allocation5]   ;;  %s1341_s29 = smov [#allocation8]  }
   0xb   :  { %s48_s28 = sshll.u32 %s1340_s27, 4  ;;  %s75_s30 = sshll.u32 %s1341_s29, 4  ;;  %s49_s28 = int_to_ptr.vmem [resolvable:$true] %s48_s28  ;;  %s76_s30 = int_to_ptr.vmem [resolvable:$true] %s75_s30 }
   0xc   :  { %s1114_s0 = scalar_lea.vmem %s49_s28, 256  ;;  %p1119_p1 = scmp.lt.s32.totalorder %s49_s28, %s49_s28 }
   0xd   :  { %p1115_p0 = scmp.ne.s32.totalorder %s49_s28, %s1114_s0  ;;  %p1120_p2 = scmp.lt.s32.totalorder %s1114_s0, %s1114_s0 }
   0xf   :  { %p1121_p3 = por %p1120_p2, %p1119_p1 }
  0x11   :  { %p1122_p4 = pnand %p1121_p3, %p1115_p0 }
  0x13   :  { %1125 = shalt.err (!%p1122_p4)
}
  0x14   :  { %s1342_s19 = smov 128   ;;  %s1343_s1 = smov 8  }
  0x15   :  { %s1648_s22 = sld [smem:[#allocation28_spill]]  ;;  %s1134_s2 = scalar_lea.vmem %s76_s30, 16 }
  0x16   :  { %p1135_p5 = scmp.ne.s32.totalorder %s76_s30, %s1134_s2  ;;  %s1138_s23 = scalar_lea.vmem %s76_s30, 32 }
  0x17   :  { %p1139_p6 = scmp.lt.s32.totalorder %s76_s30, %s76_s30  ;;  %p1140_p7 = scmp.lt.s32.totalorder %s1138_s23, %s1134_s2 }
  0x19   :  { %p1141_p8 = por %p1140_p7, %p1139_p6 }
  0x1b   :  { %54 = dma.hbm_to_vmem [thread:$0]  %s1648_s22, 256, %s49_s28, [#allocation6], %s1342_s19, %s1342_s19, %s1343_s1  }
  0x1c   :  { %p1142_p9 = pnand %p1141_p8, %p1135_p5 }
  0x1e   :  { %1145 = shalt.err (!%p1142_p9)
}
  0x1f   :  { %78 = dma.hbm_to_vmem [thread:$0]  %s1630_s4, 16, %s76_s30, [#allocation9]  }
  0x20   :  { %s1344_s26 = smov [#allocation11]   ;;  %s1345_s29 = smov [#allocation2]  }
  0x21   :  { %s97_s27 = sshll.u32 %s1344_s26, 4  ;;  %s36_s0 = sshll.u32 %s1345_s29, 4  ;;  %s98_s27 = int_to_ptr.vmem [resolvable:$true] %s97_s27  ;;  %s37_s0 = int_to_ptr.vmem [resolvable:$true] %s36_s0 }
  0x22   :  { %s1154_s20 = scalar_lea.vmem %s98_s27, 64  ;;  %p1159_p11 = scmp.lt.s32.totalorder %s98_s27, %s98_s27 }
  0x23   :  { %p1155_p10 = scmp.ne.s32.totalorder %s98_s27, %s1154_s20  ;;  %p1160_p12 = scmp.lt.s32.totalorder %s1154_s20, %s1154_s20 }
  0x25   :  { %p1161_p13 = por %p1160_p12, %p1159_p11 }
  0x27   :  { %p1162_p0 = pnand %p1161_p13, %p1155_p10 }
  0x29   :  { %1165 = shalt.err (!%p1162_p0)
}
  0x2a   :  { %100 = dma.hbm_to_vmem [thread:$0]  %s1633_s7, 64, %s98_s27, [#allocation12]  }
  0x2b   :  { %s1174_s22 = scalar_lea.vmem %s37_s0, 256  ;;  %p1179_p2 = scmp.lt.s32.totalorder %s37_s0, %s37_s0 }
  0x2c   :  { %p1175_p1 = scmp.ne.s32.totalorder %s37_s0, %s1174_s22  ;;  %p1180_p3 = scmp.lt.s32.totalorder %s1174_s22, %s1174_s22 }
  0x2e   :  { %p1181_p4 = por %p1180_p3, %p1179_p2 }
  0x30   :  { %p1182_p5 = pnand %p1181_p4, %p1175_p1 }
  0x32   :  { %1185 = shalt.err (!%p1182_p5)
}
  0x33   :  { %s1649_s2 = sld [smem:[#allocation27_spill]]  ;;  %s1346_s23 = smov [#allocation7]  }
  0x34   :  { %s60_s24 = sshll.u32 %s1346_s23, 4  ;;  %s1347_s25 = smov [#allocation10]   ;;  %s61_s24 = int_to_ptr.vmem [resolvable:$true] %s60_s24 }
  0x35   :  { %s87_s26 = sshll.u32 %s1347_s25, 4  ;;  %s1194_s7 = scalar_lea.vmem %s61_s24, 256  ;;  %s88_s26 = int_to_ptr.vmem [resolvable:$true] %s87_s26 }
  0x36   :  { %p1195_p6 = scmp.ne.s32.totalorder %s61_s24, %s1194_s7  ;;  %p1199_p7 = scmp.lt.s32.totalorder %s61_s24, %s61_s24 }
  0x37   :  { %p1200_p8 = scmp.lt.s32.totalorder %s1194_s7, %s1194_s7 }
  0x39   :  { %42 = dma.hbm_to_vmem [thread:$0]  %s1649_s2, 256, %s37_s0, [#allocation3], %s1342_s19, %s1342_s19, %s1343_s1  }
  0x3a   :  { %p1201_p9 = por %p1200_p8, %p1199_p7 }
  0x3c   :  { %p1202_p10 = pnand %p1201_p9, %p1195_p6 }
  0x3e   :  { %1205 = shalt.err (!%p1202_p10)
}
  0x3f   :  { %s1650_s20 = sld [smem:[#allocation29_spill]]  ;;  %s1214_s0 = scalar_lea.vmem %s88_s26, 16 }
  0x40   :  { %p1215_p11 = scmp.ne.s32.totalorder %s88_s26, %s1214_s0  ;;  %s1218_s28 = scalar_lea.vmem %s88_s26, 32 }
  0x41   :  { %p1219_p12 = scmp.lt.s32.totalorder %s88_s26, %s88_s26  ;;  %p1220_p13 = scmp.lt.s32.totalorder %s1218_s28, %s1214_s0 }
  0x43   :  { %p1221_p0 = por %p1220_p13, %p1219_p12 }
  0x45   :  { %66 = dma.hbm_to_vmem [thread:$0]  %s1650_s20, 256, %s61_s24, [#allocation6], %s1342_s19, %s1342_s19, %s1343_s1  }
  0x46   :  { %p1222_p1 = pnand %p1221_p0, %p1215_p11 }
  0x48   :  { %1225 = shalt.err (!%p1222_p1)
}
  0x49   :  { %90 = dma.hbm_to_vmem [thread:$0]  %s1632_s6, 16, %s88_s26, [#allocation9]  }
  0x4a   :  { %s1348_s4 = smov [#allocation13]   ;;  %s1349_s2 = smov [#allocation14]  }
  0x4b   :  { %s107_s30 = sshll.u32 %s1348_s4, 4  ;;  %s116_s23 = sshll.u32 %s1349_s2, 4  ;;  %s108_s30 = int_to_ptr.vmem [resolvable:$true] %s107_s30  ;;  %s117_s23 = int_to_ptr.vmem [resolvable:$true] %s116_s23 }
  0x4c   :  { %s1234_s25 = scalar_lea.vmem %s108_s30, 16  ;;  %s1238_s24 = scalar_lea.vmem %s108_s30, 32 }
  0x4d   :  { %p1235_p2 = scmp.ne.s32.totalorder %s108_s30, %s1234_s25  ;;  %p1239_p3 = scmp.lt.s32.totalorder %s108_s30, %s108_s30 }
  0x4e   :  { %p1240_p4 = scmp.lt.s32.totalorder %s1238_s24, %s1234_s25 }
  0x50   :  { %p1241_p5 = por %p1240_p4, %p1239_p3 }
  0x52   :  { %p1242_p6 = pnand %p1241_p5, %p1235_p2 }
  0x54   :  { %1245 = shalt.err (!%p1242_p6)
}
  0x55   :  { %110 = dma.hbm_to_vmem [thread:$0]  %s1634_s8, 16, %s108_s30, [#allocation12]  }
  0x56   :  { %s1254_s29 = scalar_lea.vmem %s117_s23, 256  ;;  %p1259_p8 = scmp.lt.s32.totalorder %s117_s23, %s117_s23 }
  0x57   :  { %p1255_p7 = scmp.ne.s32.totalorder %s117_s23, %s1254_s29  ;;  %p1260_p9 = scmp.lt.s32.totalorder %s1254_s29, %s1254_s29 }
  0x59   :  { %p1261_p10 = por %p1260_p9, %p1259_p8 }
  0x5b   :  { %p1262_p11 = pnand %p1261_p10, %p1255_p7 }
  0x5d   :  { %1265 = shalt.err (!%p1262_p11)
}
  0x5e   :  { %122 = dma.hbm_to_vmem [thread:$0]  %s1635_s9, 256, %s117_s23, [#allocation15], %s1342_s19, %s1342_s19, %s1343_s1  }
  0x5f   :  { %1326 = dma.done.wait [#allocation3], 256  }
  0x60   :  { %1327 = vsyncadd [#allocation3], 4294967040 }
  0x61   :  { %1328 = dma.done.wait [#allocation6], 512  }
  0x62   :  { %1329 = vsyncadd [#allocation6], 4294966784 }
  0x63   :  { %1330 = dma.done.wait [#allocation9], 32  }
  0x64   :  { %1331 = vsyncadd [#allocation9], 4294967264 }
  0x65   :  { %1332 = dma.done.wait [#allocation12], 80  }
  0x66   :  { %1333 = vsyncadd [#allocation12], 4294967216 }
  0x67   :  { %1334 = dma.done.wait [#allocation15], 256  }
  0x68   :  { %1335 = vsyncadd [#allocation15], 4294967040  ;;  %vm166_vm0 = vcmask 261120   ;;  %v158_v0 = vld [vmem:[%s1629_s3 + $0x18] sm:$0xff]  ;;  %v157_v1 = vld [vmem:[%s1629_s3 + $0x10] sm:$0xff]  ;;  %vm350_vm1 = vcmask 130048  }
  0x69   :  { %1026 = vmatprep.subr.mxu0 %v158_v0  ;;  %v153_v2 = vld [vmem:[#allocation2] sm:$0xff]  ;;  %v156_v3 = vld [vmem:[%s1629_s3 + $0x8] sm:$0xff]  ;;  %v253_v6 = vld [vmem:[%s1631_s5 + $0x18] sm:$0xff]  ;;  %vm546_vm2 = vcmask 31744   ;;  %vm645_vm7 = vcmask 7168   ;;  %s1351_s23 = smov [#allocation16]  }
  0x6a   :  { %1027 = vmatpush3.msra.mxu0 %v158_v0  ;;  %1034 = vmatprep.mubr.msk.f32.mxu0 %vm166_vm0, %v153_v2  ;;  %v155_v4 = vld [vmem:[%s1629_s3] sm:$0xff]  ;;  %v154_v5 = vld [vmem:[#allocation2 + $0x8] sm:$0xff]  ;;  %v252_v7 = vld [vmem:[%s1631_s5 + $0x10] sm:$0xff]  ;;  %s912_s25 = sshll.u32 %s1351_s23, 4  ;;  %s913_s25 = int_to_ptr.vmem [resolvable:$true] %s912_s25 }
  0x6b   :  { %1028 = vmatprep.subr.mxu0 %v157_v1  ;;  %1037 = vmatprep.subr.mxu1 %v253_v6  ;;  %v251_v8 = vld [vmem:[%s1631_s5 + $0x8] sm:$0xff]  ;;  %v250_v9 = vld [vmem:[%s1631_s5] sm:$0xff]  ;;  %v971_v10 = vld [vmem:[#allocation8] ss:$0 sm:$0xff] }
  0x6c   :  { %1029 = vmatpush3.msra.mxu0 %v157_v1  ;;  %1038 = vmatpush3.msra.mxu1 %v253_v6  ;;  %v342_v17 = vld [vmem:[#allocation5] sm:$0xff]  ;;  %v344_v18 = vld [vmem:[#allocation7] sm:$0xff]  ;;  %v343_v21 = vld [vmem:[#allocation5 + $0x8] sm:$0xff] }
  0x6d   :  { %1030 = vmatprep.subr.mxu0 %v156_v3  ;;  %1039 = vmatprep.subr.mxu1 %v252_v7  ;;  %v346_v19 = vadd.f32 %v344_v18, %v342_v17  ;;  %v345_v22 = vld [vmem:[#allocation7 + $0x8] sm:$0xff]  ;;  %v974_v23 = vld [vmem:[#allocation10] ss:$0 sm:$0xff]  ;;  %v434_v30 = vld [vmem:[#allocation11] sm:$0xf] }
  0x6e   :  { %1031 = vmatpush3.msra.mxu0 %v156_v3  ;;  %1040 = vmatpush3.msra.mxu1 %v252_v7  ;;  %v347_v24 = vadd.f32 %v345_v22, %v343_v21  ;;  %v728_v31 = vld [vmem:[#allocation14 + $0x8] sm:$0xff]  ;;  %v727_v35 = vld [vmem:[#allocation14] sm:$0xff]  ;;  %v815_v40 = vld [vmem:[%s1637_s11 + $0x10] sm:$0xff]  ;;  %v559_v3 = vlaneseq }
  0x6f   :  { %1032 = vmatprep.subr.mxu0 %v155_v4  ;;  %1041 = vmatprep.subr.mxu1 %v251_v8  ;;  %v348_v20 = vmul.f32 0.5, %v346_v19  ;;  %v816_v39 = vld [vmem:[%s1637_s11 + $0x18] sm:$0xff]  ;;  %v814_v41 = vld [vmem:[%s1637_s11 + $0x8] sm:$0xff]  ;;  %v813_v42 = vld [vmem:[%s1637_s11] sm:$0xff] }
  0x70   :  { %1033 = vmatpush3.msra.mxu0 %v155_v4  ;;  %1042 = vmatpush3.msra.mxu1 %v251_v8  ;;  %v349_v29 = vmul.f32 0.5, %v347_v24  ;;  %v982_v50 = vld [vmem:[#allocation13] ss:$0 sm:$0xff]  ;;  %v987_v51 = vld [vmem:[%s1636_s10] ss:$0 sm:$0xff]  ;;  %v1557_v4 = vand.u32 127, %v559_v3 }
  0x71   :  { %1035 = vmatmul.mubr.msk.f32.vlgmr.msra.gmra.mxu0 %vm166_vm0, %v154_v5  ;;  %1043 = vmatprep.subr.mxu1 %v250_v9 }
  0x72   :  { %1044 = vmatpush3.msra.mxu1 %v250_v9  ;;  %1052 = vmatprep.mubr.msk.f32.mxu0 %vm350_vm1, %v348_v20 }
  0x73   :  { %1055 = vmatprep.subr.msk.mxu1 %vm350_vm1, %v434_v30 }
 0x131   :  { %v1036_v11 = vpop.f32.mrf.mxu0 }
 0x132   :  { %v245_v12 = vadd.f32 %v1036_v11, %v971_v10 }
 0x133   :  { %v239_v13 = vpop.f32.mrf.mxu0 }
 0x134   :  { %v240_v14 = vadd.f32 %v971_v10, %v239_v13  ;;  %v249_v16 = vmax.f32 %v245_v12, 0.0 }
 0x136   :  { %v248_v15 = vmax.f32 %v240_v14, 0.0 }
 0x138   :  { %1045 = vmatprep.mubr.msk.f32.mxu1 %vm166_vm0, %v248_v15  ;;  %v990_v15 = vld [vmem:[%s1638_s12] ss:$0 sm:$0xff] }
 0x139   :  { %1046 = vmatmul.mubr.msk.f32.vlgmr.msra.gmra.mxu1 %vm166_vm0, %v249_v16 }
 0x13a   :  { %1056 = vmatpush3.xpose.msk.msra.mxu1 %vm350_vm1, %v434_v30 }
 0x13b   :  { %1067 = vmatprep.subr.mxu1 %v728_v31 }
 0x1f9   :  { %v1047_v25 = vpop.f32.mrf.mxu1 }
 0x1fa   :  { %v339_v26 = vadd.f32 %v1047_v25, %v974_v23 }
 0x1fb   :  { %v333_v27 = vpop.f32.mrf.mxu1 }
 0x1fc   :  { %v334_v28 = vadd.f32 %v974_v23, %v333_v27  ;;  %1048 = vmatprep.subr.mxu0 %v339_v26 }
 0x1fd   :  { %1049 = vmatpush3.msra.mxu0 %v339_v26 }
 0x1fe   :  { %1050 = vmatprep.subr.mxu0 %v334_v28 }
 0x1ff   :  { %1051 = vmatpush3.msra.mxu0 %v334_v28 }
 0x200   :  { %1053 = vmatmul.mubr.msk.f32.vlgmr.msra.gmra.mxu0 %vm350_vm1, %v349_v29 }
 0x2c0   :  { %v1054_v32 = vpop.f32.mrf.mxu0 }
 0x2c1   :  { %433 = vst.msk [vmem:[#allocation16 + $0x8] sm:$0xff] %vm350_vm1, %v1054_v32  ;;  %1060 = vmatprep.subr.msk.mxu0 %vm350_vm1, %v1054_v32  ;;  %v520_v37 = vmul.f32 %v1054_v32, %v1054_v32 }
 0x2c2   :  { %v423_v33 = vpop.f32.mrf.mxu0  ;;  %1061 = vmatpush3.xpose.msk.msra.mxu0 %vm350_vm1, %v1054_v32 }
 0x2c3   :  { %432 = vst.msk [vmem:[#allocation16] sm:$0xff] %vm350_vm1, %v423_v33  ;;  %1057 = vmatprep.mubr.msk.f32.mxu1 %vm350_vm1, %v423_v33  ;;  %1062 = vmatprep.subr.msk.mxu0 %vm350_vm1, %v423_v33  ;;  %v519_v34 = vmul.f32 %v423_v33, %v423_v33  ;;  %v524_v38 = vsel %vm350_vm1, %v520_v37, 0.0 }
 0x2c4   :  { %1064 = vmatprep.mubr.msk.f32.mxu0 %vm350_vm1, %v423_v33  ;;  %1058 = vmatmul.mubr.msk.f32.vlgmr.msra.gmra.mxu1 %vm350_vm1, %v1054_v32 }
 0x2c5   :  { %1068 = vmatpush3.msra.mxu1 %v728_v31  ;;  %1071 = vmatprep.mubr.msk.f32.mxu1 %vm350_vm1, %v423_v33  ;;  %v521_v36 = vsel %vm350_vm1, %v519_v34, 0.0 }
 0x2c6   :  { %1063 = vmatpush3.xpose.msk.msra.mxu0 %vm350_vm1, %v423_v33  ;;  %522 = vadd.xlane.f32.xlu0 %v521_v36 }
 0x2c7   :  { %1069 = vmatprep.subr.mxu1 %v727_v35 }
 0x2c8   :  { %1070 = vmatpush3.msra.mxu1 %v727_v35 }
 0x2c9   :  { %1072 = vmatmul.mubr.msk.f32.vlgmr.msra.gmra.mxu1 %vm350_vm1, %v1054_v32  ;;  %1065 = vmatmul.mubr.msk.f32.vlgmr.msra.gmra.mxu0 %vm350_vm1, %v1054_v32 }
 0x2ca   :  { %525 = vadd.xlane.f32.xlu0 %v524_v38  ;;  %1074 = vmatprep.subr.mxu1 %v816_v39 }
 0x2cb   :  { %1075 = vmatpush3.msra.mxu1 %v816_v39 }
 0x2cc   :  { %1076 = vmatprep.subr.mxu1 %v815_v40 }
 0x2cd   :  { %1077 = vmatpush3.msra.mxu1 %v815_v40 }
 0x2ce   :  { %1078 = vmatprep.subr.mxu1 %v814_v41 }
 0x2cf   :  { %1079 = vmatpush3.msra.mxu1 %v814_v41 }
 0x2d0   :  { %1080 = vmatprep.subr.mxu1 %v813_v42 }
 0x2d1   :  { %1081 = vmatpush3.msra.mxu1 %v813_v42 }
 0x34f   :  { %v523_v43 = vpop.xlane.xlu0 %522 }
 0x353   :  { %v526_v46 = vpop.xlane.xlu0 %525 }
 0x384   :  { %v1059_v44 = vpop.f32.mrf.mxu1 }
 0x385   :  { %v528_v45 = vmul.f32 2.0, %v1059_v44 }
 0x386   :  { %v510_v47 = vpop.f32.mrf.mxu1 }
 0x387   :  { %v530_v48 = vsub.f32 %v526_v46, %v528_v45  ;;  %v527_v49 = vmul.f32 2.0, %v510_v47 }
 0x389   :  { %v529_v52 = vsub.f32 %v523_v43, %v527_v49  ;;  %v1073_v53 = vpop.f32.mrf.mxu1  ;;  %v1066_v54 = vpop.f32.mrf.mxu0  ;;  %v539_v55 = vadd.f32 %v982_v50, %v530_v48 }
 0x38a   :  { %726 = vst.msk [vmem:[#allocation17 + $0x8] sm:$0xff] %vm350_vm1, %v1066_v54  ;;  %v808_v57 = vadd.f32 %v1073_v53, %v987_v51 }
 0x38b   :  { %v538_v56 = vadd.f32 %v982_v50, %v529_v52  ;;  %v802_v58 = vpop.f32.mrf.mxu1  ;;  %v716_v59 = vpop.f32.mrf.mxu0  ;;  %v1549_v63 = vmax.f32 %v539_v55, 0.0 }
 0x38c   :  { %v803_v60 = vadd.f32 %v987_v51, %v802_v58  ;;  %725 = vst.msk [vmem:[#allocation17] sm:$0xff] %vm350_vm1, %v716_v59  ;;  %v812_v0 = vmax.f32 %v808_v57, 0.0 }
 0x38d   :  { %v1547_v61 = vmax.f32 %v538_v56, 0.0  ;;  %v564_v2 = vsel %vm546_vm2, %v1549_v63, inf  ;;  %v543_v43 = vadd.f32 1.0, %v1549_v63 }
 0x38e   :  { %v811_v62 = vmax.f32 %v803_v60, 0.0 }
 0x38f   :  { %v561_v1 = vsel %vm546_vm2, %v1547_v61, inf  ;;  %v542_v42 = vadd.f32 1.0, %v1547_v61 }
 0x390   :  { %1082 = vmatprep.mubr.msk.f32.mxu1 %vm166_vm0, %v811_v62  ;;  %562 = vmin.xlane.f32.xlu1 %v561_v1 }
 0x391   :  { %1083 = vmatmul.mubr.msk.f32.vlgmr.msra.gmra.mxu1 %vm166_vm0, %v812_v0  ;;  %1098 = vrcp.f32 %v542_v42 }
 0x392   :  { %1100 = vrcp.f32 %v543_v43 }
 0x394   :  { %565 = vmin.xlane.f32.xlu1 %v564_v2 }
 0x39e   :  { %v1099_v52 = vpop.eup %1098 }
 0x39f   :  { %v547_v55 = vsel %vm546_vm2, %v1099_v52, 0.0  ;;  %v1101_v56 = vpop.eup %1100 }
 0x3a0   :  { %v550_v57 = vsel %vm546_vm2, %v1101_v56, 0.0 }
 0x419   :  { %v563_v5 = vpop.xlane.xlu1 %562 }
 0x41a   :  { %vm567_vm3 = vcmp.eq.f32.partialorder %v1547_v61, %v563_v5 }
 0x41b   :  { %v569_v6 = vsel %vm567_vm3, %v1557_v4, 4 }
 0x41c   :  { %v571_v7 = vsel %vm546_vm2, %v569_v6, 2147483647 }
 0x41d   :  { %v566_v8 = vpop.xlane.xlu1 %565  ;;  %v573_v9 = vshra.s32 %v571_v7, 16  ;;  %v572_v20 = vand.u32 65535, %v571_v7 }
 0x41e   :  { %vm568_vm4 = vcmp.eq.f32.partialorder %v1549_v63, %v566_v8 }
 0x41f   :  { %v570_v10 = vsel %vm568_vm4, %v1557_v4, 4  ;;  %v575_v11 = vcvt.s32.f32 %v573_v9  ;;  %v574_v22 = vcvt.s32.f32 %v572_v20 }
 0x420   :  { %v586_v12 = vsel %vm546_vm2, %v570_v10, 2147483647 }
 0x421   :  { %576 = vmin.xlane.f32.xlu0 %v575_v11  ;;  %v588_v13 = vshra.s32 %v586_v12, 16  ;;  %v587_v23 = vand.u32 65535, %v586_v12 }
 0x423   :  { %v590_v14 = vcvt.s32.f32 %v588_v13  ;;  %v589_v26 = vcvt.s32.f32 %v587_v23 }
 0x425   :  { %591 = vmin.xlane.f32.xlu1 %v590_v14 }
 0x451   :  { %v1084_v16 = vpop.f32.mrf.mxu1 }
 0x452   :  { %v902_v17 = vadd.f32 %v1084_v16, %v990_v15 }
 0x453   :  { %v896_v18 = vpop.f32.mrf.mxu1 }
 0x454   :  { %906 = vst.msk [vmem:[#allocation19 + $0x8] sm:$0xff] %vm166_vm0, %v902_v17  ;;  %v897_v19 = vadd.f32 %v990_v15, %v896_v18 }
 0x456   :  { %905 = vst.msk [vmem:[#allocation19] sm:$0xff] %vm166_vm0, %v897_v19 }
 0x4aa   :  { %v577_v21 = vpop.xlane.xlu0 %576 }
 0x4ab   :  { %vm578_vm5 = vcmp.eq.f32.partialorder %v575_v11, %v577_v21  ;;  %v583_v28 = vcvt.f32.s32 %v577_v21 }
 0x4ac   :  { %v579_v24 = vsel %vm578_vm5, %v574_v22, inf }
 0x4ad   :  { %580 = vmin.xlane.f32.xlu0 %v579_v24  ;;  %v584_v30 = vshll.u32 %v583_v28, 16 }
 0x4ae   :  { %v592_v25 = vpop.xlane.xlu1 %591 }
 0x4af   :  { %vm593_vm6 = vcmp.eq.f32.partialorder %v590_v14, %v592_v25  ;;  %v598_v31 = vcvt.f32.s32 %v592_v25 }
 0x4b0   :  { %v594_v27 = vsel %vm593_vm6, %v589_v26, inf }
 0x4b1   :  { %595 = vmin.xlane.f32.xlu1 %v594_v27  ;;  %v599_v35 = vshll.u32 %v598_v31, 16 }
 0x536   :  { %v581_v29 = vpop.xlane.xlu0 %580 }
 0x537   :  { %v582_v32 = vcvt.f32.s32 %v581_v29 }
 0x539   :  { %v585_v33 = vadd.s32 %v584_v30, %v582_v32 }
 0x53a   :  { %v596_v34 = vpop.xlane.xlu1 %595 }
 0x53b   :  { %646 = vst.msk [vmem:[%s1643_s17] sm:$0xff] %vm645_vm7, %v585_v33  ;;  %v597_v36 = vcvt.f32.s32 %v596_v34  ;;  %vm601_vm8 = vcmp.eq.s32.totalorder %v1557_v4, %v585_v33 }
 0x53c   :  { %v603_v37 = vsel %vm601_vm8, inf, %v1547_v61 }
 0x53d   :  { %v600_v38 = vadd.s32 %v599_v35, %v597_v36  ;;  %v605_v39 = vsel %vm546_vm2, %v603_v37, inf }
 0x53e   :  { %606 = vmin.xlane.f32.xlu0 %v605_v39 }
 0x53f   :  { %647 = vst.msk [vmem:[%s1643_s17 + $0x8] sm:$0xff] %vm645_vm7, %v600_v38  ;;  %vm602_vm9 = vcmp.eq.s32.totalorder %v1557_v4, %v600_v38  ;;  %s1350_s17 = smov [#allocation17]  }
 0x540   :  { %v604_v40 = vsel %vm602_vm9, inf, %v1549_v63  ;;  %s924_s2 = sshll.u32 %s1350_s17, 4  ;;  %s925_s2 = int_to_ptr.vmem [resolvable:$true] %s924_s2 }
 0x541   :  { %v608_v41 = vsel %vm546_vm2, %v604_v40, inf  ;;  %s1266_s7 = scalar_lea.vmem %s925_s2, 256  ;;  %p1271_p13 = scmp.lt.s32.totalorder %s925_s2, %s925_s2 }
 0x542   :  { %609 = vmin.xlane.f32.xlu1 %v608_v41  ;;  %p1267_p12 = scmp.ne.s32.totalorder %s925_s2, %s1266_s7  ;;  %p1272_p0 = scmp.lt.s32.totalorder %s1266_s7, %s1266_s7 }
 0x544   :  { %p1273_p1 = por %p1272_p0, %p1271_p13 }
 0x546   :  { %p1274_p2 = pnand %p1273_p1, %p1267_p12 }
 0x5c7   :  { %v607_v44 = vpop.xlane.xlu0 %606 }
 0x5c8   :  { %vm611_vm10 = vcmp.eq.f32.partialorder %v603_v37, %v607_v44 }
 0x5c9   :  { %v613_v45 = vsel %vm611_vm10, %v1557_v4, 4 }
 0x5ca   :  { %v615_v46 = vsel %vm546_vm2, %v613_v45, 2147483647 }
 0x5cb   :  { %v610_v47 = vpop.xlane.xlu1 %609  ;;  %v617_v48 = vshra.s32 %v615_v46, 16  ;;  %v616_v58 = vand.u32 65535, %v615_v46 }
 0x5cc   :  { %vm612_vm11 = vcmp.eq.f32.partialorder %v604_v40, %v610_v47 }
 0x5cd   :  { %v614_v49 = vsel %vm612_vm11, %v1557_v4, 4  ;;  %v619_v50 = vcvt.s32.f32 %v617_v48  ;;  %v618_v60 = vcvt.s32.f32 %v616_v58 }
 0x5ce   :  { %v630_v51 = vsel %vm546_vm2, %v614_v49, 2147483647 }
 0x5cf   :  { %620 = vmin.xlane.f32.xlu0 %v619_v50  ;;  %v632_v53 = vshra.s32 %v630_v51, 16  ;;  %v631_v61 = vand.u32 65535, %v630_v51 }
 0x5d1   :  { %v634_v54 = vcvt.s32.f32 %v632_v53  ;;  %v633_v1 = vcvt.s32.f32 %v631_v61 }
 0x5d3   :  { %635 = vmin.xlane.f32.xlu1 %v634_v54  ;;  %548 = vadd.xlane.f32.xlu0 %v547_v55 }
 0x5d7   :  { %551 = vadd.xlane.f32.xlu1 %v550_v57 }
 0x658   :  { %v621_v59 = vpop.xlane.xlu0 %620 }
 0x659   :  { %vm622_vm12 = vcmp.eq.f32.partialorder %v619_v50, %v621_v59 }
 0x65a   :  { %v623_v62 = vsel %vm622_vm12, %v618_v60, inf }
 0x65b   :  { %624 = vmin.xlane.f32.xlu0 %v623_v62 }
 0x65c   :  { %v636_v63 = vpop.xlane.xlu1 %635  ;;  %v549_v0 = vpop.xlane.xlu0 %548 }
 0x65d   :  { %1102 = vrcp.f32 %v549_v0  ;;  %vm637_vm13 = vcmp.eq.f32.partialorder %v634_v54, %v636_v63 }
 0x65e   :  { %v638_v2 = vsel %vm637_vm13, %v633_v1, inf }
 0x65f   :  { %639 = vmin.xlane.f32.xlu1 %v638_v2 }
 0x660   :  { %v552_v3 = vpop.xlane.xlu1 %551 }
 0x661   :  { %1104 = vrcp.f32 %v552_v3 }
 0x66a   :  { %v1103_v4 = vpop.eup %1102 }
 0x66b   :  { %v555_v5 = vmul.f32 %v1103_v4, %v1099_v52 }
 0x66d   :  { %557 = vst.msk [vmem:[%s1642_s16] sm:$0xff] %vm546_vm2, %v555_v5 }
 0x66e   :  { %1277 = shalt.err (!%p1274_p2)
}
 0x66f   :  { %930 = dma.vmem_to_hbm [thread:$0]  %s925_s2, 256, %s1640_s14, [#allocation18], %s1342_s19, %s1342_s19, %s1343_s1   ;;  %v1105_v6 = vpop.eup %1104 }
 0x670   :  { %v556_v7 = vmul.f32 %v1105_v6, %v1101_v56  ;;  %s1286_s29 = scalar_lea.vmem %s913_s25, 256  ;;  %p1291_p4 = scmp.lt.s32.totalorder %s913_s25, %s913_s25 }
 0x671   :  { %p1287_p3 = scmp.ne.s32.totalorder %s913_s25, %s1286_s29  ;;  %p1292_p5 = scmp.lt.s32.totalorder %s1286_s29, %s1286_s29 }
 0x673   :  { %p1293_p6 = por %p1292_p5, %p1291_p4 }
 0x675   :  { %p1294_p7 = pnand %p1293_p6, %p1287_p3 }
 0x677   :  { %1297 = shalt.err (!%p1294_p7)
}
 0x678   :  { %918 = dma.vmem_to_hbm [thread:$0]  %s913_s25, 256, %s1639_s13, [#allocation4], %s1342_s19, %s1342_s19, %s1343_s1  }
 0x679   :  { %s1352_s8 = smov [#allocation19]   ;;  %558 = vst.msk [vmem:[%s1642_s16 + $0x8] sm:$0xff] %vm546_vm2, %v556_v7 }
 0x67a   :  { %s936_s20 = sshll.u32 %s1352_s8, 4  ;;  %s937_s20 = int_to_ptr.vmem [resolvable:$true] %s936_s20 }
 0x67b   :  { %s1306_s28 = scalar_lea.vmem %s937_s20, 256  ;;  %p1311_p9 = scmp.lt.s32.totalorder %s937_s20, %s937_s20 }
 0x67c   :  { %p1307_p8 = scmp.ne.s32.totalorder %s937_s20, %s1306_s28  ;;  %p1312_p10 = scmp.lt.s32.totalorder %s1306_s28, %s1306_s28 }
 0x67e   :  { %p1313_p11 = por %p1312_p10, %p1311_p9 }
 0x680   :  { %p1314_p12 = pnand %p1313_p11, %p1307_p8 }
 0x682   :  { %1317 = shalt.err (!%p1314_p12)
}
 0x683   :  { %942 = dma.vmem_to_hbm [thread:$0]  %s937_s20, 256, %s1641_s15, [#allocation18], %s1342_s19, %s1342_s19, %s1343_s1   ;;  %v627_v8 = vcvt.f32.s32 %v621_v59  ;;  %v642_v11 = vcvt.f32.s32 %v636_v63 }
 0x685   :  { %v628_v10 = vshll.u32 %v627_v8, 16  ;;  %v643_v15 = vshll.u32 %v642_v11, 16 }
 0x6e4   :  { %v625_v9 = vpop.xlane.xlu0 %624 }
 0x6e5   :  { %v626_v12 = vcvt.f32.s32 %v625_v9 }
 0x6e7   :  { %v629_v13 = vadd.s32 %v628_v10, %v626_v12 }
 0x6e8   :  { %v640_v14 = vpop.xlane.xlu1 %639 }
 0x6e9   :  { %648 = vst.msk [vmem:[%s1644_s18] sm:$0xff] %vm645_vm7, %v629_v13  ;;  %v641_v16 = vcvt.f32.s32 %v640_v14 }
 0x6eb   :  { %v644_v17 = vadd.s32 %v643_v15, %v641_v16 }
 0x6ed   :  { %649 = vst.msk [vmem:[%s1644_s18 + $0x8] sm:$0xff] %vm645_vm7, %v644_v17 }
 0x6ee   :  { %1336 = dma.done.wait [#allocation4], 256  }
 0x6ef   :  { %1337 = vsyncadd [#allocation4], 4294967040 }
 0x6f0   :  { %1338 = dma.done.wait [#allocation18], 512  }
 0x6f1   :  { %1339 = vsyncadd [#allocation18], 4294966784 }
 0x6f2   :  { %964 = vsyncpa [#allocation3], 1 }
 0x6f3   :  { %965 = vsyncpa [#allocation6], 1 }
 0x6f4   :  { %966 = vsyncpa [#allocation9], 1 }
 0x6f5   :  { %967 = vsyncpa [#allocation12], 1 }
 0x6f6   :  { %968 = vsyncpa [#allocation15], 1 }
 0x6f7   :  { %969 = vsyncpa [#allocation4], 1 }
 0x6f8   :  { %970 = vsyncpa [#allocation18], 1 }

</bundles_post_ra>
